<compile_context>
chip_gen: v7x
topology: tpu7x:2x2x1
jax: 0.10.0
libtpu: 0.0.40
codegen_flags: <defaults>
</compile_context>

<pallas_src>
import functools
import math

import jax
import jax.numpy as jnp
from jax.experimental import pallas as pl
from jax.experimental.pallas import tpu as pltpu


BN_EPS = 1e-5
INV_SQRT2 = 1.0 / math.sqrt(2.0)


def _round_up(x, m):
    return (x + m - 1) // m * m


def _gelu_exact(z):
    # Exact erf-based GELU (F.gelu default).
    return 0.5 * z * (1.0 + jax.lax.erf(z * INV_SQRT2))


# ---------------------------------------------------------------------------
# Kernels
# ---------------------------------------------------------------------------
def classifier_bn_kernel(x_ref, wt_ref, gamma_ref, beta_ref, o_ref, acc_ref):
    # x_ref:     (B, TILE_K)        bf16
    # wt_ref:    (TILE_K, TILE_N)   bf16   (fc2.weight transposed, padded)
    # gamma_ref: (1, TILE_N)        f32    (bn1.weight)
    # beta_ref:  (1, TILE_N)        f32    (bn1.bias)
    # o_ref:     (B, TILE_N)        f32
    # acc_ref:   (B, TILE_N)        f32    VMEM scratch accumulator
    k = pl.program_id(1)

    @pl.when(k == 0)
    def _():
        acc_ref[...] = jnp.zeros_like(acc_ref)

    # Linear (no bias: cancelled exactly by the BN mean subtraction).
    acc_ref[...] += jnp.dot(
        x_ref[...], wt_ref[...], preferred_element_type=jnp.float32
    )

    @pl.when(k == pl.num_programs(1) - 1)
    def _():
        y = acc_ref[...]
        inv_b = 1.0 / y.shape[0]

        # BatchNorm1d (training-mode batch stats, biased variance), single pass.
        s = jnp.sum(y, axis=0, keepdims=True)
        s2 = jnp.sum(y * y, axis=0, keepdims=True)
        mean = s * inv_b
        var = jnp.maximum(s2 * inv_b - mean * mean, 0.0)
        inv_std = jax.lax.rsqrt(var + BN_EPS)          # EUP slot
        scale = gamma_ref[...] * inv_std
        shift = beta_ref[...] - mean * scale
        z = y * scale + shift

        # Dropout (eval mode) == identity.
        o_ref[...] = _gelu_exact(z).astype(o_ref.dtype)


def classifier_nobn_kernel(x_ref, wt_ref, bias_ref, o_ref, acc_ref):
    # Linear (+bias) -> exact GELU, no BatchNorm.
    k = pl.program_id(1)

    @pl.when(k == 0)
    def _():
        acc_ref[...] = jnp.zeros_like(acc_ref)

    acc_ref[...] += jnp.dot(
        x_ref[...], wt_ref[...], preferred_element_type=jnp.float32
    )

    @pl.when(k == pl.num_programs(1) - 1)
    def _():
        z = acc_ref[...] + bias_ref[...]
        o_ref[...] = _gelu_exact(z).astype(o_ref.dtype)


# ---------------------------------------------------------------------------
# One-time parameter prep (static; outside the forward path)
# ---------------------------------------------------------------------------
def prepare_weights(w, b, gamma, beta, *, tile_n=128, tile_k=128):
    """Transpose / pad fc2.weight to the tile grid, cast to bf16; pad vectors."""
    d_out, d_in = w.shape
    d_in_p = _round_up(d_in, tile_k)
    d_out_p = _round_up(d_out, tile_n)

    wt = jnp.transpose(w)                                             # (Din, Dout)
    wt = jnp.pad(wt, ((0, d_in_p - d_in), (0, d_out_p - d_out)))
    wt = wt.astype(jnp.bfloat16)

    pad_n = d_out_p - d_out
    b2 = jnp.pad(b.astype(jnp.float32), (0, pad_n)).reshape(1, d_out_p)
    g2 = jnp.pad(gamma.astype(jnp.float32), (0, pad_n),
                 constant_values=1.0).reshape(1, d_out_p)
    be2 = jnp.pad(beta.astype(jnp.float32), (0, pad_n)).reshape(1, d_out_p)
    return wt, b2, g2, be2


# ---------------------------------------------------------------------------
# Forward wrapper
# ---------------------------------------------------------------------------
@functools.partial(jax.jit,
                   static_argnames=("d_out", "if_bn", "tile_n", "tile_k"))
def classifier_forward(x, wt, bias2, gamma2, beta2, *, d_out, if_bn=True,
                       tile_n=128, tile_k=128):
    """x: (B, *) arbitrary trailing shape (flattened like `view(B, -1)`).
    wt: (Din_p, Dout_p) bf16 (pre-transposed/padded); bias2/gamma2/beta2: (1, Dout_p) f32.
    Returns (B, d_out) f32."""
    B = x.shape[0]
    x2d = x.reshape(B, -1)
    d_in = x2d.shape[1]
    d_in_p, d_out_p = wt.shape
    assert d_in_p == _round_up(d_in, tile_k) and d_out_p % tile_n == 0

    # Zero-pad Din (zero input columns x zero weight rows contribute nothing).
    x2d = jnp.pad(x2d, ((0, 0), (0, d_in_p - d_in))).astype(jnp.bfloat16)

    n_tiles = d_out_p // tile_n
    k_tiles = d_in_p // tile_k

    x_spec = pl.BlockSpec((B, tile_k), lambda j, k: (0, k))
    w_spec = pl.BlockSpec((tile_k, tile_n), lambda j, k: (k, j))
    vec_spec = pl.BlockSpec((1, tile_n), lambda j, k: (0, j))
    out_spec = pl.BlockSpec((B, tile_n), lambda j, k: (0, j))

    if if_bn:
        kernel = classifier_bn_kernel
        in_specs = [x_spec, w_spec, vec_spec, vec_spec]
        operands = (x2d, wt, gamma2, beta2)
    else:
        kernel = classifier_nobn_kernel
        in_specs = [x_spec, w_spec, vec_spec]
        operands = (x2d, wt, bias2)

    out = pl.pallas_call(
        kernel,
        out_shape=jax.ShapeDtypeStruct((B, d_out_p), jnp.float32),
        grid_spec=pltpu.PrefetchScalarGridSpec(
            num_scalar_prefetch=0,
            grid=(n_tiles, k_tiles),
            in_specs=in_specs,
            out_specs=out_spec,
            scratch_shapes=[pltpu.VMEM((B, tile_n), jnp.float32)],
        ),
        compiler_params=pltpu.CompilerParams(
            dimension_semantics=("parallel", "arbitrary"),
            vmem_limit_bytes=64 * 1024 * 1024,
        ),
    )(*operands)

    return out[:, :d_out]


# ---------------------------------------------------------------------------
# Init + pure-JAX reference (mirrors the PyTorch module)
# ---------------------------------------------------------------------------
def init_params(key, input_dim, output_dim):
    # xavier_uniform_ for fc2.weight, fc2.bias = 0.01, bn1.weight = 1, bn1.bias = 0
    bound = math.sqrt(6.0 / (input_dim + output_dim))
    w = jax.random.uniform(key, (output_dim, input_dim),
                           minval=-bound, maxval=bound, dtype=jnp.float32)
    b = jnp.full((output_dim,), 0.01, dtype=jnp.float32)
    gamma = jnp.ones((output_dim,), dtype=jnp.float32)
    beta = jnp.zeros((output_dim,), dtype=jnp.float32)
    return w, b, gamma, beta


def reference_forward(x, w, b, gamma, beta, *, if_bn=True,
                      matmul_dtype=jnp.float32):
    B = x.shape[0]
    x2d = x.reshape(B, -1)
    y = jnp.dot(x2d.astype(matmul_dtype), w.T.astype(matmul_dtype),
                preferred_element_type=jnp.float32) + b
    if if_bn:
        mean = jnp.mean(y, axis=0, keepdims=True)
        var = jnp.mean((y - mean) ** 2, axis=0, keepdims=True)
        y = (y - mean) / jnp.sqrt(var + BN_EPS) * gamma + beta
    return _gelu_exact(y)


if __name__ == "__main__":
    # Small shapes: batch=8, channels=4, spatial=8 -> Din = 4*8*8 = 256,
    # output_dim = 160 (padded to 256 inside) -> grid = (2, 2).
    key = jax.random.PRNGKey(0)
    kx, kw = jax.random.split(key)

    x = jax.random.normal(kx, (8, 4, 8, 8), dtype=jnp.float32)
    input_dim = 4 * 8 * 8
    output_dim = 160

    w, b, gamma, beta = init_params(kw, input_dim, output_dim)
    wt, b2, g2, be2 = prepare_weights(w, b, gamma, beta)   # one-time static prep

    # ---- if_bn = True path (Linear -> BN -> GELU) ----
    out_bn = classifier_forward(x, wt, b2, g2, be2, d_out=output_dim, if_bn=True)
    out_bn = jax.block_until_ready(out_bn)
    assert out_bn.shape == (8, output_dim)

    ref_bn_bf16 = reference_forward(x, w, b, gamma, beta, if_bn=True,
                                    matmul_dtype=jnp.bfloat16)
    assert jnp.allclose(out_bn, ref_bn_bf16, atol=2e-2, rtol=2e-2), \
        "BN path: mismatch vs bf16 reference"
    ref_bn_f32 = reference_forward(x, w, b, gamma, beta, if_bn=True,
                                   matmul_dtype=jnp.float32)
    assert jnp.allclose(out_bn, ref_bn_f32, atol=5e-2, rtol=5e-2), \
        "BN path: mismatch vs f32 reference"

    # ---- if_bn = False path (Linear + bias -> GELU) ----
    out_nobn = classifier_forward(x, wt, b2, g2, be2, d_out=output_dim, if_bn=False)
    out_nobn = jax.block_until_ready(out_nobn)
    assert out_nobn.shape == (8, output_dim)

    ref_nobn_bf16 = reference_forward(x, w, b, gamma, beta, if_bn=False,
                                      matmul_dtype=jnp.bfloat16)
    assert jnp.allclose(out_nobn, ref_nobn_bf16, atol=2e-2, rtol=2e-2), \
        "no-BN path: mismatch vs bf16 reference"
    ref_nobn_f32 = reference_forward(x, w, b, gamma, beta, if_bn=False,
                                     matmul_dtype=jnp.float32)
    assert jnp.allclose(out_nobn, ref_nobn_f32, atol=5e-2, rtol=5e-2), \
        "no-BN path: mismatch vs f32 reference"

    print("KERNEL_OK")
</pallas_src>

<mosaic_0001>
module attributes {stable_mosaic.version = 11 : i64} {
  func.func @classifier_bn_kernel(%arg0: i32, %arg1: i32, %arg2: memref<8x128xbf16, #tpu.memory_space<vmem>>, %arg3: memref<128x128xbf16, #tpu.memory_space<vmem>>, %arg4: memref<1x128xf32, #tpu.memory_space<vmem>>, %arg5: memref<1x128xf32, #tpu.memory_space<vmem>>, %arg6: memref<8x128xf32, #tpu.memory_space<vmem>>, %arg7: memref<8x128xf32, #tpu.memory_space<vmem>>) attributes {dimension_semantics = [#tpu.dimension_semantics<parallel>, #tpu.dimension_semantics<arbitrary>], iteration_bounds = array<i64: 2, 2>, scalar_prefetch = 0 : i64, scratch_operands = 1 : i64, tpu.core_type = #tpu.core_type<tc>, window_params = [{transform_indices = @transform_0, window_bounds = array<i64: 8, 128>}, {transform_indices = @transform_1, window_bounds = array<i64: 128, 128>}, {transform_indices = @transform_2, window_bounds = array<i64: 1, 128>}, {transform_indices = @transform_3, window_bounds = array<i64: 1, 128>}, {transform_indices = @transform_4, window_bounds = array<i64: 8, 128>}]} {
    %c0_i32 = arith.constant 0 : i32
    %0 = arith.cmpi eq, %arg1, %c0_i32 : i32
    %1 = arith.extui %0 : i1 to i32
    %c0_i32_0 = arith.constant 0 : i32
    %2 = arith.cmpi ne, %1, %c0_i32_0 : i32
    scf.if %2 {
      %cst_9 = arith.constant 0.000000e+00 : f32
      %12 = vector.broadcast %cst_9 : f32 to vector<8x128xf32>
      %c0_10 = arith.constant 0 : index
      %c0_11 = arith.constant 0 : index
      %13 = vector.load %arg7[%c0_10, %c0_11] : memref<8x128xf32, #tpu.memory_space<vmem>>, vector<8x128xf32>
      tpu.vector_store %arg7[%c0_10, %c0_11], %12 {strides = array<i32>} : memref<8x128xf32, #tpu.memory_space<vmem>>, vector<8x128xf32>,
    } else {
    }
    %c0 = arith.constant 0 : index
    %c0_1 = arith.constant 0 : index
    %3 = vector.load %arg7[%c0, %c0_1] : memref<8x128xf32, #tpu.memory_space<vmem>>, vector<8x128xf32>
    %c0_2 = arith.constant 0 : index
    %c0_3 = arith.constant 0 : index
    %4 = vector.load %arg2[%c0_2, %c0_3] : memref<8x128xbf16, #tpu.memory_space<vmem>>, vector<8x128xbf16>
    %c0_4 = arith.constant 0 : index
    %c0_5 = arith.constant 0 : index
    %5 = vector.load %arg3[%c0_4, %c0_5] : memref<128x128xbf16, #tpu.memory_space<vmem>>, vector<128x128xbf16>
    %cst = arith.constant dense<0.000000e+00> : vector<8x128xf32>
    %6 = tpu.matmul %4, %5, %cst {dimension_numbers = #tpu.dot_dimension_numbers<[1], [0], [0], [1], [0, 0, 1, 1], [], []>} : vector<8x128xbf16>, vector<128x128xbf16>, vector<8x128xf32> -> vector<8x128xf32>
    %7 = arith.addf %3, %6 : vector<8x128xf32>
    %c0_6 = arith.constant 0 : index
    %c0_7 = arith.constant 0 : index
    %8 = vector.load %arg7[%c0_6, %c0_7] : memref<8x128xf32, #tpu.memory_space<vmem>>, vector<8x128xf32>
    tpu.vector_store %arg7[%c0_6, %c0_7], %7 {strides = array<i32>} : memref<8x128xf32, #tpu.memory_space<vmem>>, vector<8x128xf32>,
    %c1_i32 = arith.constant 1 : i32
    %9 = arith.cmpi eq, %arg1, %c1_i32 : i32
    %10 = arith.extui %9 : i1 to i32
    %c0_i32_8 = arith.constant 0 : i32
    %11 = arith.cmpi ne, %10, %c0_i32_8 : i32
    scf.if %11 {
      %c0_9 = arith.constant 0 : index
      %c0_10 = arith.constant 0 : index
      %12 = vector.load %arg7[%c0_9, %c0_10] : memref<8x128xf32, #tpu.memory_space<vmem>>, vector<8x128xf32>
      %cst_11 = arith.constant dense<0.000000e+00> : vector<128xf32>
      %13 = vector.multi_reduction <add>, %12, %cst_11 [0] : vector<8x128xf32> to vector<128xf32>
      %14 = vector.shape_cast %13 : vector<128xf32> to vector<1x128xf32>
      %15 = arith.mulf %12, %12 : vector<8x128xf32>
      %cst_12 = arith.constant dense<0.000000e+00> : vector<128xf32>
      %16 = vector.multi_reduction <add>, %15, %cst_12 [0] : vector<8x128xf32> to vector<128xf32>
      %17 = vector.shape_cast %16 : vector<128xf32> to vector<1x128xf32>
      %cst_13 = arith.constant 1.250000e-01 : f32
      %18 = vector.broadcast %cst_13 : f32 to vector<1x128xf32>
      %19 = arith.mulf %14, %18 : vector<1x128xf32>
      %cst_14 = arith.constant 1.250000e-01 : f32
      %20 = vector.broadcast %cst_14 : f32 to vector<1x128xf32>
      %21 = arith.mulf %17, %20 : vector<1x128xf32>
      %22 = arith.mulf %19, %19 : vector<1x128xf32>
      %23 = arith.subf %21, %22 : vector<1x128xf32>
      %cst_15 = arith.constant 0.000000e+00 : f32
      %24 = vector.broadcast %cst_15 : f32 to vector<1x128xf32>
      %25 = arith.maximumf %23, %24 : vector<1x128xf32>
      %cst_16 = arith.constant 9.99999974E-6 : f32
      %26 = vector.broadcast %cst_16 : f32 to vector<1x128xf32>
      %27 = arith.addf %25, %26 : vector<1x128xf32>
      %28 = math.rsqrt %27 : vector<1x128xf32>
      %c0_17 = arith.constant 0 : index
      %c0_18 = arith.constant 0 : index
      %29 = vector.load %arg4[%c0_17, %c0_18] : memref<1x128xf32, #tpu.memory_space<vmem>>, vector<1x128xf32>
      %30 = arith.mulf %29, %28 : vector<1x128xf32>
      %c0_19 = arith.constant 0 : index
      %c0_20 = arith.constant 0 : index
      %31 = vector.load %arg5[%c0_19, %c0_20] : memref<1x128xf32, #tpu.memory_space<vmem>>, vector<1x128xf32>
      %32 = arith.mulf %19, %30 : vector<1x128xf32>
      %33 = arith.subf %31, %32 : vector<1x128xf32>
      %34 = vector.broadcast %30 : vector<1x128xf32> to vector<8x128xf32>
      %35 = arith.mulf %12, %34 : vector<8x128xf32>
      %36 = vector.broadcast %33 : vector<1x128xf32> to vector<8x128xf32>
      %37 = arith.addf %35, %36 : vector<8x128xf32>
      %cst_21 = arith.constant 5.000000e-01 : f32
      %38 = vector.broadcast %cst_21 : f32 to vector<8x128xf32>
      %39 = arith.mulf %38, %37 : vector<8x128xf32>
      %cst_22 = arith.constant 0.707106769 : f32
      %40 = vector.broadcast %cst_22 : f32 to vector<8x128xf32>
      %41 = arith.mulf %37, %40 : vector<8x128xf32>
      %42 = math.erf %41 : vector<8x128xf32>
      %cst_23 = arith.constant 1.000000e+00 : f32
      %43 = vector.broadcast %cst_23 : f32 to vector<8x128xf32>
      %44 = arith.addf %43, %42 : vector<8x128xf32>
      %45 = arith.mulf %39, %44 : vector<8x128xf32>
      %c0_24 = arith.constant 0 : index
      %c0_25 = arith.constant 0 : index
      %46 = vector.load %arg6[%c0_24, %c0_25] : memref<8x128xf32, #tpu.memory_space<vmem>>, vector<8x128xf32>
      tpu.vector_store %arg6[%c0_24, %c0_25], %45 {strides = array<i32>} : memref<8x128xf32, #tpu.memory_space<vmem>>, vector<8x128xf32>,
    } else {
    }
    return
  }
  func.func @transform_0(%arg0: i32, %arg1: i32) -> (i32, i32) {
    %c0_i32 = arith.constant 0 : i32
    %c0_i32_0 = arith.constant 0 : i32
    return %c0_i32, %arg1 : i32, i32
  }
  func.func @transform_1(%arg0: i32, %arg1: i32) -> (i32, i32) {
    %c0_i32 = arith.constant 0 : i32
    return %arg1, %arg0 : i32, i32
  }
  func.func @transform_2(%arg0: i32, %arg1: i32) -> (i32, i32) {
    %c0_i32 = arith.constant 0 : i32
    %c0_i32_0 = arith.constant 0 : i32
    return %c0_i32, %arg0 : i32, i32
  }
  func.func @transform_3(%arg0: i32, %arg1: i32) -> (i32, i32) {
    %c0_i32 = arith.constant 0 : i32
    %c0_i32_0 = arith.constant 0 : i32
    return %c0_i32, %arg0 : i32, i32
  }
  func.func @transform_4(%arg0: i32, %arg1: i32) -> (i32, i32) {
    %c0_i32 = arith.constant 0 : i32
    %c0_i32_0 = arith.constant 0 : i32
    return %c0_i32, %arg0 : i32, i32
  }
}

</mosaic_0001>

<bundles_post_ra>
// kernel: classifier_forward.1
= control target key start
LH: loop header
LB: loop body
LE: loop exit
PB: predicated region body
PF: predicated region fallthrough
CT: control target
= control target key end

     0   :  { %s1641_s0 = inlined_call_operand.hbm [shape: bf16[8,256], index: 0, kind: input, shape index: {}]   ;;  %s1642_s1 = inlined_call_operand.hbm [shape: bf16[256,256], index: 1, kind: input, shape index: {}]   ;;  %s1643_s2 = inlined_call_operand.hbm [shape: f32[1,256], index: 2, kind: input, shape index: {}]   ;;  %s1644_s3 = inlined_call_operand.hbm [shape: f32[1,256], index: 3, kind: input, shape index: {}]   ;;  %s1645_s4 = inlined_call_operand.hbm [shape: f32[8,256], index: 4, kind: output, shape index: {}]  }
   0x1   :  { %1661 = sst [smem:[#allocation25_spill]] %s1641_s0 }
   0x2   :  { %1662 = sst [smem:[#allocation26_spill]] %s1642_s1 }
   0x3   :  { %1663 = sst [smem:[#allocation27_spill]] %s1645_s4 }
   0x4   :  { %9 = vsyncpa [#allocation4], 0 }
   0x5   :  { %11 = vsyncpa [#allocation4 + $0x1], 0 }
   0x6   :  { %12 = vsyncpa [#allocation7], 0 }
   0x7   :  { %14 = vsyncpa [#allocation7 + $0x1], 0 }
   0x8   :  { %15 = vsyncpa [#allocation10], 0 }
   0x9   :  { %17 = vsyncpa [#allocation10 + $0x1], 0 }
   0xa   :  { %18 = vsyncpa [#allocation5], 0 }
   0xb   :  { %20 = vsyncpa [#allocation5 + $0x1], 0  ;;  %s1191_s15 = smov 0   ;;  %s1193_s16 = smov 0  }
   0xc   :  { %s1195_s17 = smov 0   ;;  %s1197_s18 = smov 0  }
   0xd   :  { %s1199_s19 = smov 0   ;;  %s1201_s20 = smov 0  }
   0xe   :  { %s1203_s21 = smov 0   ;;  %s1205_s22 = smov 0  }
   0xf   :  { %s1207_s23 = smov 0   ;;  %s1209_s24 = smov 0  }
  0x10   :  { %s1211_s25 = smov 0   ;;  %s1213_s26 = smov 0  }
  0x11   :  { %s1215_s27 = smov 0   ;;  %s1217_s28 = smov 0  }
  0x12 LB: > { %1664 = sst [smem:[#allocation17_spill]] %s1117_s19  ;;  %p1654_p0 = scmp.eq.s32.totalorder %s1153_s28, 0  ;;  %s1153_s28 = sphi %s1217_s28, %s26_s28   ;;  %s1149_s27 = sphi %s1215_s27, %s1720_s27   ;;  %s1145_s26 = sphi %s1213_s26, %s1708_s26   ;;  %s1141_s25 = sphi %s1211_s25, %s1719_s25   ;;  %s1137_s24 = sphi %s1209_s24, %s1718_s24   ;;  %s1133_s23 = sphi %s1207_s23, %s1717_s23   ;;  %s1129_s22 = sphi %s1205_s22, %s1716_s22   ;;  %s1125_s21 = sphi %s1203_s21, %s1715_s21   ;;  %s1121_s20 = sphi %s1201_s20, %s1714_s20   ;;  %s1117_s19 = sphi %s1199_s19, %s1713_s19   ;;  %s1113_s18 = sphi %s1197_s18, %s1705_s18   ;;  %s1109_s17 = sphi %s1195_s17, %s1712_s17   ;;  %s1105_s16 = sphi %s1193_s16, %s1711_s16   ;;  %s1101_s15 = sphi %s1191_s15, %s1710_s15  }
  0x13   : > { %1665 = sst [smem:[#allocation18_spill]] %s1137_s24  ;;  %p80_p1 = scmp.ne.s32.totalorder %s1121_s20, %s1117_s19 }
  0x14   : > { %1666 = sst [smem:[#allocation19_spill]] %s1141_s25  ;;  %p1646_p4 = scmp.lt.s32.totalorder %s1153_s28, 4 }
  0x15   : > { %1667 = sst [smem:[#allocation20_spill]] %s1145_s26  ;;  %p82_p3 = por %p80_p1, %p1654_p0 }
  0x16   : > { %s206_s5 = sand.u32 1, %s1153_s28   ;;  %s208_s6 = sand.u32 1, %s1121_s20  }
  0x17   : > { %s662_s7 = sshll.u32 %s208_s6, 6  ;;  %s686_s8 = sshll.u32 %s1145_s26, 5 }
  0x18   : > { %s216_s9 = sadd.s32 %s1149_s27, %s686_s8  ;;  %s210_s10 = scalar_lea.vmem [#allocation6], %s662_s7 }
  0x19   : > { %s219_s11 = sshll.u32 %s210_s10, 4  ;;  %s665_s12 = sshll.u32 %s216_s9, 6  ;;  %s1275_s11 = int_to_ptr.vmem [resolvable:$true] %s219_s11 }
  0x1a   : > { %s1668_s1 = sld [smem:[#allocation26_spill]]  ;;  %p1284_p5 = pnand %p1646_p4, %p82_p3 }
  0x1b   : > { %s1288_s6 = scalar_lea.sflag [#allocation7], %s206_s5 }
  0x1c   : > { %p877_p7 = pneg %p1284_p5 }
  0x20   : > { %s1280_s29 = scalar_lea.hbm %s1668_s1, %s665_s12  ;;  %s880_s10 = scalar_lea.hbm %s1668_s1, 4096 }
  0x21   : > { %s875_s7 = scalar_lea.hbm %s1280_s29, 1024  ;;  %p881_p10 = scmp.lt.u32.totalorder %s1280_s29, %s1668_s1 }
  0x22   : > { %p876_p6 = scmp.ne.s32.totalorder %s1280_s29, %s875_s7  ;;  %p882_p11 = scmp.lt.u32.totalorder %s880_s10, %s875_s7 }
  0x23   : > { %p884_p13 = scmp.lt.u32.totalorder %s875_s7, %s1280_s29 }
  0x24   : > { %p878_p8 = pnand %p877_p7, %p876_p6  ;;  %p883_p12 = por %p882_p11, %p881_p10 }
  0x26   : > { %p879_p9 = pneg %p878_p8  ;;  %p885_p1 = por %p884_p13, %p883_p12 }
  0x28   : > { %p886_p3 = pnand %p885_p1, %p879_p9 }
  0x2a   : > { %889 = shalt.err (!%p886_p3)
}
  0x2b   : > { %s890_s5 = scalar_lea.vmem %s1275_s11, 1024  ;;  %s1155_s14 = smov [#allocation6]  }
  0x2c   : > { %p891_p6 = scmp.ne.s32.totalorder %s1275_s11, %s890_s5  ;;  %s895_s8 = sshll.u32 %s1155_s14, 4  ;;  %s896_s8 = int_to_ptr.vmem [resolvable:$false] %s895_s8 }
  0x2d   : > { %s897_s9 = scalar_lea.vmem %s896_s8, 2048  ;;  %p898_p2 = scmp.lt.s32.totalorder %s1275_s11, %s896_s8 }
  0x2e   : > { %p893_p8 = pnand %p891_p6, %p877_p7  ;;  %p899_p10 = scmp.lt.s32.totalorder %s897_s9, %s890_s5 }
  0x30   : > { %p894_p4 = pneg %p893_p8  ;;  %p900_p11 = por %p899_p10, %p898_p2 }
  0x32   : > { %p901_p12 = pnand %p900_p11, %p894_p4 }
  0x34   : > { %904 = shalt.err (!%p901_p12)
}
  0x35   : > { %s1156_s7 = smov 128   ;;  %s1157_s10 = smov 64  }
  0x36   : > { %s1158_s12 = smov 4   ;;  %p668_p2 = scmp.ge.s32.totalorder %s1153_s28, 1 }
  0x37   : > { %732 = dma.hbm_to_vmem [thread:$0]  (!%p1284_p5), %s1280_s29, 1024, %s1275_s11, %s1288_s6, %s1156_s7, %s1157_s10, %s1158_s12  }
  0x38   : > { %p261_p4 = scmp.lt.s32.totalorder %s1153_s28, 5  ;;  %s1323_s5 = sadd.s32 4294967295, %s1153_s28  }
  0x39   : > { %s35_s14 = sadd.s32 1, %s1145_s26  ;;  %s45_s8 = sadd.s32 1, %s1133_s23 }
  0x3a   : > { %p1318_p7 = pnand %p668_p2, %p261_p4  ;;  %p36_p9 = scmp.ge.s32.totalorder %s35_s14, 2 }
  0x3b   : > { %p52_p5 = scmp.ne.s32.totalorder %s1133_s23, %s1129_s22  ;;  %p58_p13 = scmp.ne.s32.totalorder %s1129_s22, %s1125_s21 }
  0x3c   : > { %s1670_s13 = scalar_select %p1318_p7, 1, 0 }
  0x3d   : > { %p1653_p1 = scmp.eq.s32.totalorder %s1323_s5, 0  ;;  %s1722_s14 = smov (%p36_p9, %s35_s14), 0 }
  0x3e   : > { %1671 = sst [smem:[#allocation21_spill]] %s1722_s14  ;;  %s1672_s29 = sadd.s32 1, %s1149_s27 }
  0x3f   : > { %s1724_s29 = smov (!%p36_p9, %s1672_s29), %s1149_s27  ;;  %s42_s30 = ssub.s32 %s1145_s26, %s1722_s14 }
  0x40   : > { %p1341_p3 = por %p1654_p0, %p52_p5  ;;  %p40_p6 = scmp.ge.s32.totalorder %s1724_s29, 2 }
  0x41   : > { %p43_p8 = scmp.eq.s32.totalorder %s42_s30, 0  ;;  %p1347_p10 = por %p1653_p1, %p58_p13 }
  0x42   : > { %p1675_p11 = scmp.ne.s32.totalorder %s1117_s19, %s1113_s18  ;;  %s1726_s29 = smov (%p40_p6, %s1724_s29), 0 }
  0x43   : > { %s1674_s21 = scalar_select %p1347_p10, 1, 0 }
  0x44   : > { %p1356_p12 = por %p1675_p11, %p1653_p1  ;;  %1678 = sst [smem:[#allocation23_spill]] %s1726_s29 }
  0x45   : > { %s1363_s7 = scalar_select %p43_p8, %s1133_s23, %s45_s8  }
  0x46   : > { %s1676_s9 = scalar_select %p1356_p12, 1, 0 }
  0x47   : > { %1679 = sst [smem:[#allocation24_spill]] %s1363_s7  ;;  %s1367_s10 = ssub.s32 %s1149_s27, %s1726_s29 }
  0x48   : > { %1677 = sst [smem:[#allocation22_spill]] %s1676_s9  ;;  %s188_s12 = sand.u32 1, %s1133_s23  }
  0x49   : > { %s70_s1 = sor.u32 %s1367_s10, %s42_s30  ;;  %s660_s14 = sshll.u32 %s188_s12, 2 }
  0x4a   : > { %p71_p2 = scmp.eq.s32.totalorder %s70_s1, 0  ;;  %s661_s4 = sshll.u32 %s1145_s26, 6 }
  0x4b   : > { %s1680_s25 = sadd.s32 1, %s1121_s20  ;;  %s1681_s0 = sld [smem:[#allocation25_spill]] }
  0x4c   : > { %s1375_s24 = scalar_select %p71_p2, %s1121_s20, %s1680_s25  }
  0x4d   : > { %s192_s8 = scalar_lea.vmem [#allocation3], %s660_s14  ;;  %p1682_p4 = scmp.lt.s32.totalorder %s1153_s28, 4 }
  0x4e   : > { %s199_s29 = sshll.u32 %s192_s8, 4  ;;  %s189_s25 = scalar_lea.sflag [#allocation4], %s188_s12  ;;  %s1382_s29 = int_to_ptr.vmem [resolvable:$true] %s199_s29 }
  0x4f   : > { %p1388_p9 = pnand %p1682_p4, %p1341_p3 }
  0x51   : > { %s1380_s9 = scalar_lea.hbm %s1681_s0, %s661_s4  ;;  %p907_p13 = pneg %p1388_p9 }
  0x52   : > { %s905_s19 = scalar_lea.hbm %s1380_s9, 64  ;;  %s910_s30 = scalar_lea.hbm %s1681_s0, 128 }
  0x53   : > { %p906_p5 = scmp.ne.s32.totalorder %s1380_s9, %s905_s19  ;;  %p911_p3 = scmp.lt.u32.totalorder %s1380_s9, %s1681_s0 }
  0x54   : > { %p912_p11 = scmp.lt.u32.totalorder %s910_s30, %s905_s19  ;;  %p914_p4 = scmp.lt.u32.totalorder %s905_s19, %s1380_s9 }
  0x55   : > { %p908_p6 = pnand %p907_p13, %p906_p5 }
  0x56   : > { %p913_p2 = por %p912_p11, %p911_p3 }
  0x57   : > { %p909_p8 = pneg %p908_p6 }
  0x58   : > { %p915_p1 = por %p914_p4, %p913_p2 }
  0x5a   : > { %p916_p0 = pnand %p915_p1, %p909_p8 }
  0x5c   : > { %919 = shalt.err (!%p916_p0)
}
  0x5d   : > { %s920_s12 = scalar_lea.vmem %s1382_s29, 64  ;;  %s1159_s8 = smov [#allocation3]  }
  0x5e   : > { %p921_p5 = scmp.ne.s32.totalorder %s1382_s29, %s920_s12  ;;  %s925_s4 = sshll.u32 %s1159_s8, 4  ;;  %s926_s4 = int_to_ptr.vmem [resolvable:$false] %s925_s4 }
  0x5f   : > { %s927_s14 = scalar_lea.vmem %s926_s4, 128  ;;  %p928_p10 = scmp.lt.s32.totalorder %s1382_s29, %s926_s4 }
  0x60   : > { %p923_p6 = pnand %p921_p5, %p907_p13  ;;  %p929_p3 = scmp.lt.s32.totalorder %s927_s14, %s920_s12 }
  0x62   : > { %p924_p12 = pneg %p923_p6  ;;  %p930_p11 = por %p929_p3, %p928_p10 }
  0x64   : > { %p931_p2 = pnand %p930_p11, %p924_p12 }
  0x66   : > { %934 = shalt.err (!%p931_p2)
}
  0x67   : > { %729 = dma.hbm_to_vmem [thread:$0]  (!%p1388_p9), %s1380_s9, 64, %s1382_s29, %s189_s25  }
  0x68   : > { %s657_s19 = sadd.s32 4294967294, %s1153_s28   ;;  %p97_p0 = scmp.eq.s32.totalorder %s1367_s10, 0 }
  0x69   : > { %s99_s1 = sadd.s32 1, %s1109_s17  ;;  %p106_p1 = scmp.ne.s32.totalorder %s1109_s17, %s1105_s16 }
  0x6a   : > { %p112_p10 = scmp.ne.s32.totalorder %s1105_s16, %s1101_s15  ;;  %p1684_p12 = scmp.eq.s32.totalorder %s1153_s28, 0 }
  0x6b   : > { %s1425_s30 = scalar_select %p97_p0, %s1109_s17, %s99_s1  }
  0x6c   : > { %p108_p13 = por %p106_p1, %p1684_p12  ;;  %p1685_p8 = scmp.eq.s32.totalorder %s1323_s5, 0 }
  0x6d   : > { %p162_p5 = scmp.eq.s32.totalorder %s1323_s5, 3  ;;  %p168_p6 = scmp.eq.s32.totalorder %s657_s19, 3 }
  0x6e   : > { %p1431_p4 = por %p112_p10, %p1685_p8  ;;  %s1437_s18 = sand.u32 1, %s1109_s17  }
  0x6f   : > { %s1657_s29 = sshll.u32 %s1149_s27, 4  ;;  %p1440_p9 = por %p162_p5, %p106_p1 }
  0x70   : > { %s1686_s11 = scalar_select %p1431_p4, 1, 0 }
  0x71   : > { %s1687_s9 = scalar_select %p1440_p9, 1, 0 }
  0x72   : > { %p1444_p3 = por %p168_p6, %p112_p10  ;;  %s1453_s8 = scalar_lea.hbm %s1643_s2, %s1657_s29 }
  0x73   : > { %s232_s4 = scalar_lea.vmem [#allocation8], %s1437_s18  ;;  %p1689_p11 = scmp.lt.s32.totalorder %s1153_s28, 4 }
  0x74   : > { %s1688_s10 = scalar_select %p1444_p3, 1, 0 }
  0x75   : > { %s239_s14 = sshll.u32 %s232_s4, 4  ;;  %p1458_p2 = pnand %p1689_p11, %p108_p13  ;;  %s240_s14 = int_to_ptr.vmem [resolvable:$true] %s239_s14 }
  0x76   : > { %s935_s1 = scalar_lea.hbm %s1453_s8, 16  ;;  %s940_s4 = scalar_lea.hbm %s1643_s2, 32 }
  0x77   : > { %p936_p0 = scmp.ne.s32.totalorder %s1453_s8, %s935_s1  ;;  %p937_p1 = pneg %p1458_p2 }
  0x78   : > { %p941_p13 = scmp.lt.u32.totalorder %s1453_s8, %s1643_s2  ;;  %p942_p8 = scmp.lt.u32.totalorder %s940_s4, %s935_s1 }
  0x79   : > { %p938_p10 = pnand %p937_p1, %p936_p0  ;;  %p944_p6 = scmp.lt.u32.totalorder %s935_s1, %s1453_s8 }
  0x7a   : > { %p943_p5 = por %p942_p8, %p941_p13 }
  0x7b   : > { %p939_p12 = pneg %p938_p10 }
  0x7c   : > { %p945_p11 = por %p944_p6, %p943_p5 }
  0x7e   : > { %p946_p3 = pnand %p945_p11, %p939_p12 }
  0x80   : > { %949 = shalt.err (!%p946_p3)
}
  0x81   : > { %s950_s26 = scalar_lea.vmem %s240_s14, 16  ;;  %s1160_s7 = smov [#allocation8]  }
  0x82   : > { %p951_p9 = scmp.ne.s32.totalorder %s240_s14, %s950_s26  ;;  %s955_s25 = sshll.u32 %s1160_s7, 4  ;;  %s956_s25 = int_to_ptr.vmem [resolvable:$false] %s955_s25 }
  0x83   : > { %s957_s12 = scalar_lea.vmem %s956_s25, 32  ;;  %p958_p4 = scmp.lt.s32.totalorder %s240_s14, %s956_s25 }
  0x84   : > { %p953_p0 = pnand %p951_p9, %p937_p1  ;;  %p959_p7 = scmp.lt.s32.totalorder %s957_s12, %s950_s26 }
  0x86   : > { %p954_p10 = pneg %p953_p0  ;;  %p960_p8 = por %p959_p7, %p958_p4 }
  0x88   : > { %p961_p13 = pnand %p960_p8, %p954_p10 }
  0x8a   : > { %964 = shalt.err (!%p961_p13)
}
  0x8b   : > { %735 = dma.hbm_to_vmem [thread:$0]  (!%p1458_p2), %s1453_s8, 16, %s240_s14, %s1288_s6  }
  0x8c   : > { %s1691_s0 = sshll.u32 %s1149_s27, 4  ;;  %s249_s26 = scalar_lea.vmem [#allocation9], %s1437_s18 }
  0x8d   : > { %s1489_s7 = scalar_lea.hbm %s1644_s3, %s1691_s0  ;;  %s256_s4 = sshll.u32 %s249_s26, 4  ;;  %s257_s4 = int_to_ptr.vmem [resolvable:$true] %s256_s4 }
  0x8e   : > { %s247_s25 = scalar_lea.sflag [#allocation10], %s1437_s18  ;;  %s965_s12 = scalar_lea.hbm %s1489_s7, 16 }
  0x8f   : > { %p966_p7 = scmp.ne.s32.totalorder %s1489_s7, %s965_s12  ;;  %s970_s14 = scalar_lea.hbm %s1644_s3, 32 }
  0x90   : > { %p971_p3 = scmp.lt.u32.totalorder %s1489_s7, %s1644_s3  ;;  %p972_p12 = scmp.lt.u32.totalorder %s970_s14, %s965_s12 }
  0x91   : > { %p968_p4 = pnand %p966_p7, %p937_p1  ;;  %p974_p6 = scmp.lt.u32.totalorder %s965_s12, %s1489_s7 }
  0x92   : > { %p973_p5 = por %p972_p12, %p971_p3 }
  0x93   : > { %p969_p9 = pneg %p968_p4 }
  0x94   : > { %p975_p11 = por %p974_p6, %p973_p5 }
  0x96   : > { %p976_p0 = pnand %p975_p11, %p969_p9 }
  0x98   : > { %979 = shalt.err (!%p976_p0)
}
  0x99   : > { %s980_s18 = scalar_lea.vmem %s257_s4, 16  ;;  %s1161_s1 = smov [#allocation9]  }
  0x9a   : > { %p981_p10 = scmp.ne.s32.totalorder %s257_s4, %s980_s18  ;;  %s985_s26 = sshll.u32 %s1161_s1, 4  ;;  %s986_s26 = int_to_ptr.vmem [resolvable:$false] %s985_s26 }
  0x9b   : > { %s987_s6 = scalar_lea.vmem %s986_s26, 32  ;;  %p988_p7 = scmp.lt.s32.totalorder %s257_s4, %s986_s26 }
  0x9c   : > { %p983_p8 = pnand %p981_p10, %p937_p1  ;;  %p989_p4 = scmp.lt.s32.totalorder %s987_s6, %s980_s18 }
  0x9e   : > { %p984_p13 = pneg %p983_p8  ;;  %p990_p3 = por %p989_p4, %p988_p7 }
  0xa0   : > { %p991_p12 = pnand %p990_p3, %p984_p13 }
  0xa2   : > { %994 = shalt.err (!%p991_p12)
}
  0xa3   : > { %738 = dma.hbm_to_vmem [thread:$0]  (!%p1458_p2), %s1489_s7, 16, %s257_s4, %s247_s25  }
  0xa4   : > { %p1692_p9 = scmp.ne.s32.totalorder %s1670_s13, 0 }
  0xa5   : > { %s267_s12 = sand.u32 (!%p1692_p9), 1, %s1129_s22   ;;  %p1693_p1 = scmp.ne.s32.totalorder (!%p1692_p9), %s1674_s21, 0 }
  0xa6   : > { %265 = sbr.rel (%p1692_p9) target bundleno = 547 (0x223), region = 36  ;;  %s1515_s8 = sshll.u32 (!%p1692_p9), %s267_s12, 2 }
  0xa7   : > { %s268_s14 = scalar_lea.sflag (!%p1692_p9), [#allocation4], %s267_s12  ;;  %s271_s0 = scalar_lea.vmem (!%p1692_p9), [#allocation3], %s1515_s8 }
  0xad   : > { %1080 = dma.done.wait (%p1693_p1), %s268_s14, 64  }
  0xae   : > { %1082 = vsyncadd (%p1693_p1), %s268_s14, 4294967232  ;;  %s1694_s19 = sld [smem:[#allocation17_spill]]  ;;  %s1695_s29 = sld [smem:[#allocation22_spill]] }
  0xaf   : > { %s276_s7 = sand.u32 1, %s1323_s5  }
  0xb0   : > { %s277_s25 = scalar_lea.sflag [#allocation7], %s276_s7 }
  0xb4   : > { %s278_s4 = sand.u32 1, %s1694_s19   ;;  %p1696_p2 = scmp.ne.s32.totalorder %s1695_s29, 0 }
  0xb5   : > { %s670_s13 = sshll.u32 %s278_s4, 6 }
  0xb6   : > { %s1524_s18 = scalar_lea.vmem [#allocation6], %s670_s13 }
  0xb7   : > { %1084 = dma.done.wait (%p1696_p2), %s277_s25, 1024  }
  0xb8   : > { %1086 = vsyncadd (%p1696_p2), %s277_s25, 4294966272  ;;  %s1531_s1 = sand.u32 1, %s1105_s16   ;;  %p1697_p5 = scmp.ne.s32.totalorder %s1686_s11, 0 }
  0xb9   : > { %s288_s21 = scalar_lea.vmem [#allocation8], %s1531_s1 }
  0xba   : > { %1088 = dma.done.wait (%p1697_p5), %s277_s25, 16  }
  0xbb   : > { %1090 = vsyncadd (%p1697_p5), %s277_s25, 4294967280  ;;  %s294_s5 = scalar_lea.sflag [#allocation10], %s1531_s1  ;;  %s296_s26 = scalar_lea.vmem [#allocation9], %s1531_s1 }
  0xbc   : > { %1092 = dma.done.wait (%p1697_p5), %s294_s5, 16  }
  0xbd   : > { %1094 = vsyncadd (%p1697_p5), %s294_s5, 4294967280  ;;  %s671_s6 = sshll.u32 %s1531_s1, 3  ;;  %s1698_s14 = sld [smem:[#allocation18_spill]] }
  0xbe   : > { %s1545_s12 = scalar_lea.vmem [#allocation11], %s671_s6 }
  0xc3   : > { %p672_p6 = scmp.ne.s32.totalorder %s1698_s14, 0 }
  0xc4   : > { %v1162_v0 = vmov (!%p672_p6), 0.0  }
  0xc5   : > { %339 = sbr.rel (%p672_p6) target bundleno = 204 (0xcc), region = 56  ;;  %340 = vst [vmem:[#allocation2] sm:$0xff] (!%p672_p6), %v1162_v0 }
  0xcc PF: > { %v863_v1 = vld [vmem:[%s1524_s18] sm:$0xff]   ;;  %v1163_v2 = vmov 0.0   ;;  %v864_v3 = vld [vmem:[%s1524_s18 + $0x8] sm:$0xff]   ;;  %vm1164_vm0 = vmmov 0   ;;  %v865_v4 = vld [vmem:[%s1524_s18 + $0x10] sm:$0xff]   ;;  %s1699_s11 = sld [smem:[#allocation18_spill]] }
  0xcd   : > { %696 = vmatprep.subr.bf16.mxu0 %v1163_v2  ;;  %712 = vmatprep.mubr.msk.bf16.mxu0 %vm1164_vm0, %v1163_v2  ;;  %v866_v5 = vld [vmem:[%s1524_s18 + $0x18] sm:$0xff]   ;;  %v867_v6 = vld [vmem:[%s1524_s18 + $0x20] sm:$0xff]   ;;  %v868_v7 = vld [vmem:[%s1524_s18 + $0x28] sm:$0xff]  }
  0xce   : > { %697 = vmatpush3.bf16.msra.mxu0 %v863_v1  ;;  %v869_v8 = vld [vmem:[%s1524_s18 + $0x30] sm:$0xff]   ;;  %v870_v9 = vld [vmem:[%s1524_s18 + $0x38] sm:$0xff]  }
  0xcf   : > { %698 = vmatprep.subr.bf16.mxu0 %v1163_v2  ;;  %v342_v10 = vld [vmem:[%s271_s0] sm:$0xf]  ;;  %v341_v11 = vld [vmem:[#allocation2] sm:$0xff] }
  0xd2   : > { %699 = vmatpush3.bf16.msra.mxu0 %v864_v3  ;;  %p681_p11 = scmp.ne.s32.totalorder %s1699_s11, 1 }
  0xd3   : > { %700 = vmatprep.subr.bf16.mxu0 %v1163_v2  ;;  %v480_v37 = vlaneseq (!%p681_p11)  ;;  %v474_v39 = vld [vmem:[%s288_s21] sm:$0x1] (!%p681_p11) }
  0xd4   : > { %v476_v43 = vld [vmem:[%s296_s26] sm:$0x1] (!%p681_p11) }
  0xd5   : > { %v481_v38 = vshrl.u32 (!%p681_p11), %v480_v37, 7 }
  0xd6   : > { %701 = vmatpush3.bf16.msra.mxu0 %v865_v4 }
  0xd7   : > { %702 = vmatprep.subr.bf16.mxu0 %v1163_v2  ;;  %v482_v40 = vsub.s32 (!%p681_p11), 0, %v481_v38 }
  0xda   : > { %703 = vmatpush3.bf16.msra.mxu0 %v866_v5 }
  0xdb   : > { %704 = vmatprep.subr.bf16.mxu0 %v1163_v2 }
  0xde   : > { %705 = vmatpush3.bf16.msra.mxu0 %v867_v6 }
  0xdf   : > { %706 = vmatprep.subr.bf16.mxu0 %v1163_v2 }
  0xe2   : > { %707 = vmatpush3.bf16.msra.mxu0 %v868_v7 }
  0xe3   : > { %708 = vmatprep.subr.bf16.mxu0 %v1163_v2 }
  0xe6   : > { %709 = vmatpush3.bf16.msra.mxu0 %v869_v8 }
  0xe7   : > { %710 = vmatprep.subr.bf16.mxu0 %v1163_v2 }
  0xea   : > { %711 = vmatpush3.bf16.msra.mxu0 %v870_v9 }
  0xed   : > { %713 = vmatmul.mubr.bf16.vlgmr.msra.gmra.mrb[0].mxu0 %v342_v10 }
 0x1bd   : > { %452 = sbr.rel (%p681_p11) target bundleno = 520 (0x208), region = 60 }
 0x1c0   : > { %v441_v12 = vpop.f32.mrb[0].mxu0 }
 0x1c1   : > { %v447_v13 = vadd.f32 %v441_v12, %v341_v11  ;;  %v714_v14 = vpop.f32.mrb[1].mxu0 }
 0x1c2   : > { %v444_v15 = vpop.f32.mrb[2].mxu0 }
 0x1c3   : > { %448 = vst [vmem:[#allocation2] sm:$0xff] %v447_v13  ;;  %v715_v16 = vpop.f32.mrb[3].mxu0 }
 0x1ca   : > { %v453_v17 = vld [vmem:[#allocation2] sm:$0xff] }
 0x1cb   : > { %v454_v18 = vrot.slane %v453_v17, 4  ;;  %v460_v19 = vmul.f32 %v453_v17, %v453_v17 }
 0x1cd   : > { %v455_v20 = vadd.f32 %v454_v18, %v453_v17  ;;  %v461_v21 = vrot.slane %v460_v19, 4 }
 0x1cf   : > { %v456_v22 = vrot.slane %v455_v20, 2  ;;  %v462_v23 = vadd.f32 %v461_v21, %v460_v19 }
 0x1d1   : > { %v457_v24 = vadd.f32 %v456_v22, %v455_v20  ;;  %v463_v25 = vrot.slane %v462_v23, 2 }
 0x1d3   : > { %v458_v26 = vrot.slane %v457_v24, 1  ;;  %v464_v27 = vadd.f32 %v463_v25, %v462_v23 }
 0x1d5   : > { %v459_v28 = vadd.f32 %v458_v26, %v457_v24  ;;  %v465_v29 = vrot.slane %v464_v27, 1 }
 0x1d7   : > { %v466_v30 = vadd.f32 %v465_v29, %v464_v27  ;;  %v467_v31 = vmul.f32 0.125, %v459_v28 }
 0x1d9   : > { %v468_v32 = vmul.f32 0.125, %v466_v30  ;;  %v469_v33 = vmul.f32 %v467_v31, %v467_v31 }
 0x1db   : > { %v470_v34 = vsub.f32 %v468_v32, %v469_v33 }
 0x1dd   : > { %v471_v35 = vmax.f32 %v470_v34, 0.0 }
 0x1df   : > { %v472_v36 = vadd.f32 1e-05, %v471_v35 }
 0x1e1   : > { %871 = vrsqrt.f32 %v472_v36 }
 0x1eb   : > { %v872_v41 = vpop.eup %871 }
 0x1ec   : > { %v475_v42 = vmul.f32 %v872_v41, %v474_v39 }
 0x1ee   : > { %v477_v44 = vmul.f32 %v475_v42, %v467_v31  ;;  %v483_v45 = vrot.slane %v475_v42, %v482_v40 }
 0x1f0   : > { %v478_v46 = vsub.f32 %v476_v43, %v477_v44  ;;  %v485_v47 = vmul.f32 %v483_v45, %v453_v17 }
 0x1f2   : > { %v490_v48 = vrot.slane %v478_v46, %v482_v40 }
 0x1f4   : > { %v492_v49 = vadd.f32 %v490_v48, %v485_v47 }
 0x1f6   : > { %v494_v50 = vmul.f32 0.70710677, %v492_v49  ;;  %v493_v51 = vmul.f32 0.5, %v492_v49 }
 0x1f8   : > { %873 = verf.f32 %v494_v50 }
 0x202   : > { %v874_v52 = vpop.eup %873 }
 0x203   : > { %v496_v53 = vadd.f32 1.0, %v874_v52 }
 0x205   : > { %v497_v54 = vmul.f32 %v496_v53, %v493_v51 }
 0x207   : > { %498 = vst [vmem:[%s1545_s12] sm:$0xff] %v497_v54 }
 0x208 PF: > { %s1700_s8 = sld [smem:[#allocation19_spill]]  ;;  %s1701_s7 = sld [smem:[#allocation27_spill]] }
 0x209   : > { %s513_s13 = sshll.u32 %s1545_s12, 4  ;;  %s500_s25 = scalar_lea.sflag [#allocation5], %s1531_s1  ;;  %s514_s13 = int_to_ptr.vmem [resolvable:$true] %s513_s13 }
 0x20a   : > { %s995_s18 = scalar_lea.vmem %s514_s13, 128  ;;  %p1702_p10 = scmp.ne.s32.totalorder %s1687_s9, 0 }
 0x20b   : > { %p996_p0 = scmp.ne.s32.totalorder %s514_s13, %s995_s18  ;;  %s1165_s21 = smov [#allocation11]  }
 0x20c   : > { %s999_s5 = sshll.u32 %s1165_s21, 4  ;;  %s1000_s5 = int_to_ptr.vmem [resolvable:$false] %s999_s5 }
 0x20d   : > { %p997_p8 = pnand %p996_p0, %p1702_p10  ;;  %s1001_s26 = scalar_lea.vmem %s1000_s5, 256 }
 0x20e   : > { %s683_s0 = sshll.u32 %s1700_s8, 7  ;;  %p1002_p7 = scmp.lt.s32.totalorder %s514_s13, %s1000_s5 }
 0x20f   : > { %s1568_s4 = scalar_lea.hbm %s1701_s7, %s683_s0  ;;  %p998_p13 = pneg %p997_p8 }
 0x210   : > { %p1003_p4 = scmp.lt.s32.totalorder %s1001_s26, %s995_s18 }
 0x212   : > { %p1004_p3 = por %p1003_p4, %p1002_p7 }
 0x214   : > { %p1005_p12 = pnand %p1004_p3, %p998_p13 }
 0x216   : > { %1008 = shalt.err (!%p1005_p12)
}
 0x217   : > { %s1009_s1 = scalar_lea.hbm %s1568_s4, 128  ;;  %s1013_s14 = scalar_lea.hbm %s1701_s7, 256 }
 0x218   : > { %p1010_p9 = scmp.ne.s32.totalorder %s1568_s4, %s1009_s1  ;;  %p1014_p5 = scmp.lt.u32.totalorder %s1568_s4, %s1701_s7 }
 0x219   : > { %p1015_p6 = scmp.lt.u32.totalorder %s1013_s14, %s1009_s1  ;;  %p1017_p0 = scmp.lt.u32.totalorder %s1009_s1, %s1568_s4 }
 0x21a   : > { %p1011_p1 = pnand %p1010_p9, %p1702_p10 }
 0x21b   : > { %p1016_p11 = por %p1015_p6, %p1014_p5 }
 0x21c   : > { %p1012_p2 = pneg %p1011_p1 }
 0x21d   : > { %p1018_p8 = por %p1017_p0, %p1016_p11 }
 0x21f   : > { %p1019_p13 = pnand %p1018_p8, %p1012_p2 }
 0x221   : > { %1022 = shalt.err (!%p1019_p13)
}
 0x222   : > { %724 = dma.vmem_to_hbm [thread:$0]  (%p1702_p10), %s514_s13, 128, %s1568_s4, %s500_s25  }
 0x223 PF: > { %p744_p7 = scmp.ge.s32.totalorder %s1153_s28, 2  ;;  %s525_s0 = sand.u32 1, %s1101_s15  }
 0x224   : > { %p1703_p4 = scmp.ne.s32.totalorder %s1688_s10, 0  ;;  %s526_s19 = scalar_lea.sflag [#allocation5], %s525_s0 }
 0x226   : > { %p740_p3 = pnand %p744_p7, %p1703_p4 }
 0x228   : > { %1096 = dma.done.wait (!%p740_p3), %s526_s19, 128  }
 0x229   : > { %1098 = vsyncadd (!%p740_p3), %s526_s19, 4294967168  ;;  %s26_s28 = sadd.s32 1, %s1153_s28   ;;  %s1705_s18 = sld [smem:[#allocation17_spill]] }
 0x22a   : > { %p1594_p12 = scmp.ge.s32.totalorder %s26_s28, 6   ;;  %s1706_s9 = sld [smem:[#allocation24_spill]] }
 0x22b   : > { %s1707_s10 = sld [smem:[#allocation20_spill]]  ;;  %s1708_s26 = sld [smem:[#allocation21_spill]] }
 0x22c   : > { %s1709_s4 = sld [smem:[#allocation23_spill]]  ;;  %s1710_s15 = smov %s1105_s16 }
 0x22d   : > { %s1711_s16 = smov %s1109_s17  ;;  %s1712_s17 = smov %s1425_s30 }
 0x22e   : > { %s1713_s19 = smov %s1121_s20  ;;  %s1714_s20 = smov %s1375_s24 }
 0x22f   : > { %s1715_s21 = smov %s1129_s22  ;;  %s1716_s22 = smov %s1133_s23 }
 0x230   : > { %s1717_s23 = smov %s1706_s9  ;;  %s1719_s25 = smov %s1149_s27 }
 0x231   : > { %s1718_s24 = smov %s1707_s10  ;;  %25 = sbr.rel (!%p1594_p12) target bundleno = 18 (0x12), region = 126 }
 0x232   : > { %s1720_s27 = smov %s1709_s4 }
 0x238   :  { %531 = vsyncpa [#allocation4], 1 }
 0x239   :  { %533 = vsyncpa [#allocation4 + $0x1], 1 }
 0x23a   :  { %534 = vsyncpa [#allocation7], 1 }
 0x23b   :  { %536 = vsyncpa [#allocation7 + $0x1], 1 }
 0x23c   :  { %537 = vsyncpa [#allocation10], 1 }
 0x23d   :  { %539 = vsyncpa [#allocation10 + $0x1], 1 }
 0x23e   :  { %540 = vsyncpa [#allocation5], 1 }
 0x23f   :  { %542 = vsyncpa [#allocation5 + $0x1], 1 }

</bundles_post_ra>
